<compile_context>
chip_gen: v5e
topology: v5e:2x2
jax: 0.10.0
libtpu: 0.0.40
codegen_flags: <defaults>
</compile_context>

<pallas_src>
import jax
import jax.numpy as jnp
from jax.experimental import pallas as pl
from jax.experimental.pallas import tpu as pltpu


# ----------------------------------------------------------------------------
# Fused kernel: conv3x3 (one K=3*(W+2)*C matmul, batch folded into M) + bias
#               + ReLU + global average pool (matmul form) + linear head.
# ----------------------------------------------------------------------------
def fused_backbone_kernel(x_ref, bmat_ref, b1_ref, poolblk_ref, pw2_ref,
                          b2_ref, o_ref):
    # x_ref       : (N*H, 3*(W+2)*C)    kh-shifted padded row slices, concat'd on lanes
    # bmat_ref    : (3*(W+2)*C, W*C_out) Toeplitz-expanded conv weight (kh-major rows)
    # b1_ref      : (1, W*C_out)        conv bias tiled over W
    # poolblk_ref : (N, N*H)            block-diagonal scaled-ones GAP selector
    # pw2_ref     : (W*C_out, F)        pool selector folded into head weight
    # b2_ref      : (1, F)              head bias
    # o_ref       : (N, F)
    conv = jnp.maximum(
        jnp.dot(x_ref[...], bmat_ref[...],
                preferred_element_type=jnp.float32) + b1_ref[...],
        0.0)                                                   # (N*H, W*C_out)
    pooled = jnp.dot(poolblk_ref[...], conv,
                     preferred_element_type=jnp.float32)       # (N, W*C_out)
    o_ref[...] = (jnp.dot(pooled, pw2_ref[...],
                          preferred_element_type=jnp.float32)
                  + b2_ref[...]).astype(o_ref.dtype)           # single (N, F) store


def full_network_forward(x_nchw, params):
    """forward(x) = backbone(x); backbone = conv3x3+ReLU -> GAP -> linear."""
    w1, b1, w2, b2 = params                  # w1: (9*C_in, C_out), rows = (kh, kw, c_in)
    n, c, h, w = x_nchw.shape
    c_out = w1.shape[1]
    f = w2.shape[1]
    hp, wp = h + 2, w + 2

    # ---- layout plumbing (XLA side, tiny): NCHW -> NHWC, pad, merge (W, C)
    # into lanes, then build the three kh-shifted row slices once and stack
    # the batch along sublanes so the kernel sees one lane-dense M=N*H operand.
    x_nhwc = jnp.transpose(x_nchw, (0, 2, 3, 1))                 # (N, H, W, C)
    x_pad = jnp.pad(x_nhwc, ((0, 0), (1, 1), (1, 1), (0, 0)))    # (N, H+2, W+2, C)
    x2 = x_pad.reshape(n, hp, wp * c)                            # (N, H+2, (W+2)*C)
    xcat = jnp.concatenate([x2[:, i:i + h, :] for i in range(3)],
                           axis=2).reshape(n * h, 3 * wp * c)    # (N*H, 3*(W+2)*C)

    # ---- one-time weight transforms (tiny) ----------------------------------
    # Toeplitz-expand the conv weight so each kh offset is a lane-dense block;
    # rows ordered kh-major to match xcat's lane concatenation:
    #   bmat[(i*Wp + p)*C + cc, ww*C_out + o] = w1[(i*3 + (p-ww))*C + cc, o]
    # TODO(synk): at realistic W this expansion grows ~quadratically; tile W or
    # expand in-kernel before scaling (v7x VMEM budget).
    wc = w1.reshape(3, 3, c, c_out)                              # (kh, kw, C_in, C_out)
    onehot = (jnp.arange(wp)[:, None, None]
              == (jnp.arange(w)[None, :, None] + jnp.arange(3)[None, None, :])
              ).astype(w1.dtype)                                 # (Wp, W, 3)
    bmat = jnp.einsum('pwj,ijco->ipcwo', onehot,
                      wc).reshape(3 * wp * c, w * c_out)         # (3*Wp*C, W*C_out)

    b1_tiled = jnp.tile(b1.reshape(1, c_out), (1, w))            # (1, W*C_out)
    pw2 = jnp.tile(w2, (w, 1))                                   # (W*C_out, F) == pool_sel @ w2
    pool_blk = (jnp.repeat(jnp.eye(n, dtype=jnp.float32), h, axis=1)
                / float(h * w))                                  # (N, N*H)

    return pl.pallas_call(
        fused_backbone_kernel,
        out_shape=jax.ShapeDtypeStruct((n, f), jnp.float32),
        grid_spec=pltpu.PrefetchScalarGridSpec(
            num_scalar_prefetch=0,
            grid=(1,),     # whole problem is <1 MiB of VMEM -> one step
            in_specs=[
                pl.BlockSpec((n * h, 3 * wp * c), lambda i: (0, 0)),
                pl.BlockSpec((3 * wp * c, w * c_out), lambda i: (0, 0)),
                pl.BlockSpec((1, w * c_out), lambda i: (0, 0)),
                pl.BlockSpec((n, n * h), lambda i: (0, 0)),
                pl.BlockSpec((w * c_out, f), lambda i: (0, 0)),
                pl.BlockSpec((1, f), lambda i: (0, 0)),
            ],
            out_specs=pl.BlockSpec((n, f), lambda i: (0, 0)),
        ),
        compiler_params=pltpu.CompilerParams(
            dimension_semantics=("arbitrary",)),
    )(xcat, bmat, b1_tiled, pool_blk, pw2, b2)


# ----------------------------------------------------------------------------
# Reference-only helpers (plain JAX; NOT on the kernel hot path)
# ----------------------------------------------------------------------------
def im2col_3x3(x_nchw):
    x = jnp.transpose(x_nchw, (0, 2, 3, 1))
    n, h, w, c = x.shape
    xp = jnp.pad(x, ((0, 0), (1, 1), (1, 1), (0, 0)))
    cols = []
    for i in range(3):
        for j in range(3):
            cols.append(xp[:, i:i + h, j:j + w, :])
    patches = jnp.stack(cols, axis=3)            # (N, H, W, 9, C)
    return patches.reshape(n * h * w, 9 * c), (n, h, w)


def init_params(key, c_in=4, c_out=8, feat=16):
    k1, k2, k3, k4 = jax.random.split(key, 4)
    w1 = jax.random.normal(k1, (9 * c_in, c_out), jnp.float32) * 0.1
    b1 = jax.random.normal(k2, (1, c_out), jnp.float32) * 0.1
    w2 = jax.random.normal(k3, (c_out, feat), jnp.float32) * 0.1
    b2 = jax.random.normal(k4, (1, feat), jnp.float32) * 0.1
    return w1, b1, w2, b2


if __name__ == "__main__":
    key = jax.random.PRNGKey(0)
    kx, kp = jax.random.split(key)
    N, C, H, W = 2, 4, 16, 16
    x = jax.random.normal(kx, (N, C, H, W), jnp.float32)
    params = init_params(kp, c_in=C, c_out=8, feat=16)

    fwd = jax.jit(full_network_forward)
    out = jax.block_until_ready(fwd(x, params))

    # Reference check in plain JAX (same math, straightforward im2col formulation).
    w1, b1, w2, b2 = params
    patches, _ = im2col_3x3(x)
    ref_conv = jnp.maximum(patches @ w1 + b1, 0.0).reshape(N, H * W, 8)
    ref = jnp.mean(ref_conv, axis=1) @ w2 + b2

    assert out.shape == (N, 16)
    assert jnp.allclose(out, ref, atol=1e-4, rtol=1e-4)

    print("KERNEL_OK")
</pallas_src>

<mosaic_0001>
module attributes {stable_mosaic.version = 11 : i64} {
  func.func @fused_backbone_kernel(%arg0: i32, %arg1: memref<32x216xf32, #tpu.memory_space<vmem>>, %arg2: memref<216x128xf32, #tpu.memory_space<vmem>>, %arg3: memref<1x128xf32, #tpu.memory_space<vmem>>, %arg4: memref<2x32xf32, #tpu.memory_space<vmem>>, %arg5: memref<128x16xf32, #tpu.memory_space<vmem>>, %arg6: memref<1x16xf32, #tpu.memory_space<vmem>>, %arg7: memref<2x16xf32, #tpu.memory_space<vmem>>) attributes {dimension_semantics = [#tpu.dimension_semantics<arbitrary>], iteration_bounds = array<i64: 1>, scalar_prefetch = 0 : i64, scratch_operands = 0 : i64, tpu.core_type = #tpu.core_type<tc>, window_params = [{pipeline_mode = #tpu.pipeline_mode<synchronous>, transform_indices = @transform_0, window_bounds = array<i64: 32, 216>}, {pipeline_mode = #tpu.pipeline_mode<synchronous>, transform_indices = @transform_1, window_bounds = array<i64: 216, 128>}, {pipeline_mode = #tpu.pipeline_mode<synchronous>, transform_indices = @transform_2, window_bounds = array<i64: 1, 128>}, {pipeline_mode = #tpu.pipeline_mode<synchronous>, transform_indices = @transform_3, window_bounds = array<i64: 2, 32>}, {pipeline_mode = #tpu.pipeline_mode<synchronous>, transform_indices = @transform_4, window_bounds = array<i64: 128, 16>}, {pipeline_mode = #tpu.pipeline_mode<synchronous>, transform_indices = @transform_5, window_bounds = array<i64: 1, 16>}, {pipeline_mode = #tpu.pipeline_mode<synchronous>, transform_indices = @transform_6, window_bounds = array<i64: 2, 16>}]} {
    %c0 = arith.constant 0 : index
    %c0_0 = arith.constant 0 : index
    %0 = vector.load %arg1[%c0, %c0_0] : memref<32x216xf32, #tpu.memory_space<vmem>>, vector<32x216xf32>
    %c0_1 = arith.constant 0 : index
    %c0_2 = arith.constant 0 : index
    %1 = vector.load %arg2[%c0_1, %c0_2] : memref<216x128xf32, #tpu.memory_space<vmem>>, vector<216x128xf32>
    %cst = arith.constant dense<0.000000e+00> : vector<32x128xf32>
    %2 = tpu.matmul %0, %1, %cst {dimension_numbers = #tpu.dot_dimension_numbers<[1], [0], [0], [1], [0, 0, 1, 1], [], []>} : vector<32x216xf32>, vector<216x128xf32>, vector<32x128xf32> -> vector<32x128xf32>
    %c0_3 = arith.constant 0 : index
    %c0_4 = arith.constant 0 : index
    %3 = vector.load %arg3[%c0_3, %c0_4] : memref<1x128xf32, #tpu.memory_space<vmem>>, vector<1x128xf32>
    %4 = vector.broadcast %3 : vector<1x128xf32> to vector<32x128xf32>
    %5 = arith.addf %2, %4 : vector<32x128xf32>
    %cst_5 = arith.constant 0.000000e+00 : f32
    %6 = vector.broadcast %cst_5 : f32 to vector<32x128xf32>
    %7 = arith.maximumf %5, %6 : vector<32x128xf32>
    %c0_6 = arith.constant 0 : index
    %c0_7 = arith.constant 0 : index
    %8 = vector.load %arg4[%c0_6, %c0_7] : memref<2x32xf32, #tpu.memory_space<vmem>>, vector<2x32xf32>
    %cst_8 = arith.constant dense<0.000000e+00> : vector<2x128xf32>
    %9 = tpu.matmul %8, %7, %cst_8 {dimension_numbers = #tpu.dot_dimension_numbers<[1], [0], [0], [1], [0, 0, 1, 1], [], []>} : vector<2x32xf32>, vector<32x128xf32>, vector<2x128xf32> -> vector<2x128xf32>
    %c0_9 = arith.constant 0 : index
    %c0_10 = arith.constant 0 : index
    %10 = vector.load %arg5[%c0_9, %c0_10] : memref<128x16xf32, #tpu.memory_space<vmem>>, vector<128x16xf32>
    %cst_11 = arith.constant dense<0.000000e+00> : vector<2x16xf32>
    %11 = tpu.matmul %9, %10, %cst_11 {dimension_numbers = #tpu.dot_dimension_numbers<[1], [0], [0], [1], [0, 0, 1, 1], [], []>} : vector<2x128xf32>, vector<128x16xf32>, vector<2x16xf32> -> vector<2x16xf32>
    %c0_12 = arith.constant 0 : index
    %c0_13 = arith.constant 0 : index
    %12 = vector.load %arg6[%c0_12, %c0_13] : memref<1x16xf32, #tpu.memory_space<vmem>>, vector<1x16xf32>
    %13 = vector.broadcast %12 : vector<1x16xf32> to vector<2x16xf32>
    %14 = arith.addf %11, %13 : vector<2x16xf32>
    %c0_14 = arith.constant 0 : index
    %c0_15 = arith.constant 0 : index
    %15 = vector.load %arg7[%c0_14, %c0_15] : memref<2x16xf32, #tpu.memory_space<vmem>>, vector<2x16xf32>
    tpu.vector_store %arg7[%c0_14, %c0_15], %14 {strides = array<i32>} : memref<2x16xf32, #tpu.memory_space<vmem>>, vector<2x16xf32>,
    return
  }
  func.func @transform_0(%arg0: i32) -> (i32, i32) {
    %c0_i32 = arith.constant 0 : i32
    %c0_i32_0 = arith.constant 0 : i32
    %c0_i32_1 = arith.constant 0 : i32
    return %c0_i32, %c0_i32_0 : i32, i32
  }
  func.func @transform_1(%arg0: i32) -> (i32, i32) {
    %c0_i32 = arith.constant 0 : i32
    %c0_i32_0 = arith.constant 0 : i32
    %c0_i32_1 = arith.constant 0 : i32
    return %c0_i32, %c0_i32_0 : i32, i32
  }
  func.func @transform_2(%arg0: i32) -> (i32, i32) {
    %c0_i32 = arith.constant 0 : i32
    %c0_i32_0 = arith.constant 0 : i32
    %c0_i32_1 = arith.constant 0 : i32
    return %c0_i32, %c0_i32_0 : i32, i32
  }
  func.func @transform_3(%arg0: i32) -> (i32, i32) {
    %c0_i32 = arith.constant 0 : i32
    %c0_i32_0 = arith.constant 0 : i32
    %c0_i32_1 = arith.constant 0 : i32
    return %c0_i32, %c0_i32_0 : i32, i32
  }
  func.func @transform_4(%arg0: i32) -> (i32, i32) {
    %c0_i32 = arith.constant 0 : i32
    %c0_i32_0 = arith.constant 0 : i32
    %c0_i32_1 = arith.constant 0 : i32
    return %c0_i32, %c0_i32_0 : i32, i32
  }
  func.func @transform_5(%arg0: i32) -> (i32, i32) {
    %c0_i32 = arith.constant 0 : i32
    %c0_i32_0 = arith.constant 0 : i32
    %c0_i32_1 = arith.constant 0 : i32
    return %c0_i32, %c0_i32_0 : i32, i32
  }
  func.func @transform_6(%arg0: i32) -> (i32, i32) {
    %c0_i32 = arith.constant 0 : i32
    %c0_i32_0 = arith.constant 0 : i32
    %c0_i32_1 = arith.constant 0 : i32
    return %c0_i32, %c0_i32_0 : i32, i32
  }
}

</mosaic_0001>

<bundles_post_ra>
// kernel: full_network_forward.1
= control target key start
LH: loop header
LB: loop body
LE: loop exit
PB: predicated region body
PF: predicated region fallthrough
CT: control target
= control target key end

     0   :  { %s476_s0 = inlined_call_operand.vmem [shape: f32[32,216], index: 0, kind: input, shape index: {}]   ;;  %s477_s1 = inlined_call_operand.vmem [shape: f32[216,128], index: 1, kind: input, shape index: {}]   ;;  %s478_s2 = inlined_call_operand.vmem [shape: f32[1,128], index: 2, kind: input, shape index: {}]   ;;  %s479_s3 = inlined_call_operand.vmem [shape: f32[2,32], index: 3, kind: input, shape index: {}]   ;;  %s480_s4 = inlined_call_operand.vmem [shape: f32[128,16], index: 4, kind: input, shape index: {}]   ;;  %s481_s5 = inlined_call_operand.vmem [shape: f32[1,16], index: 5, kind: input, shape index: {}]   ;;  %s482_s6 = inlined_call_operand.hbm [shape: f32[2,16], index: 6, kind: output, shape index: {}]  }
   0x1   :  { %v47_v0 = vld [vmem:[%s477_s1 + $0x78] sm:$0xff]  ;;  %v46_v1 = vld [vmem:[%s477_s1 + $0x70] sm:$0xff]  ;;  %v57_v3 = vld [vmem:[%s477_s1 + $0xc8] sm:$0xff] }
   0x2   :  { %v58_v2 = vld [vmem:[%s477_s1 + $0xd0] sm:$0xff]  ;;  %76 = vmatpush.msra.mxu0 %v47_v0  ;;  %v45_v4 = vld [vmem:[%s477_s1 + $0x68] sm:$0xff]  ;;  %v56_v5 = vld [vmem:[%s477_s1 + $0xc0] sm:$0xff]  ;;  %226 = vmatpush.msra.mxu2 %v47_v0 }
   0x3   :  { %110 = vmatpush.msra.mxu1 %v58_v2  ;;  %v44_v6 = vld [vmem:[%s477_s1 + $0x60] sm:$0xff]  ;;  %v55_v7 = vld [vmem:[%s477_s1 + $0xb8] sm:$0xff]  ;;  %v54_v9 = vld [vmem:[%s477_s1 + $0xb0] sm:$0xff] }
   0x4   :  { %77 = vmatpush.msra.mxu0 %v46_v1  ;;  %227 = vmatpush.msra.mxu2 %v46_v1  ;;  %v43_v8 = vld [vmem:[%s477_s1 + $0x58] sm:$0xff]  ;;  %v42_v10 = vld [vmem:[%s477_s1 + $0x50] sm:$0xff]  ;;  %v53_v11 = vld [vmem:[%s477_s1 + $0xa8] sm:$0xff] }
   0x5   :  { %111 = vmatpush.msra.mxu1 %v57_v3  ;;  %v41_v12 = vld [vmem:[%s477_s1 + $0x48] sm:$0xff]  ;;  %v52_v13 = vld [vmem:[%s477_s1 + $0xa0] sm:$0xff]  ;;  %v51_v15 = vld [vmem:[%s477_s1 + $0x98] sm:$0xff] }
   0x6   :  { %78 = vmatpush.msra.mxu0 %v45_v4  ;;  %228 = vmatpush.msra.mxu2 %v45_v4  ;;  %v40_v14 = vld [vmem:[%s477_s1 + $0x40] sm:$0xff] }
   0x7   :  { %112 = vmatpush.msra.mxu1 %v56_v5 }
   0x8   :  { %79 = vmatpush.msra.mxu0 %v44_v6  ;;  %229 = vmatpush.msra.mxu2 %v44_v6 }
   0x9   :  { %113 = vmatpush.msra.mxu1 %v55_v7 }
   0xa   :  { %80 = vmatpush.msra.mxu0 %v43_v8  ;;  %230 = vmatpush.msra.mxu2 %v43_v8 }
   0xb   :  { %114 = vmatpush.msra.mxu1 %v54_v9 }
   0xc   :  { %81 = vmatpush.msra.mxu0 %v42_v10  ;;  %231 = vmatpush.msra.mxu2 %v42_v10 }
   0xd   :  { %115 = vmatpush.msra.mxu1 %v53_v11 }
   0xe   :  { %11 = vsyncpa [#allocation3], 0  ;;  %82 = vmatpush.msra.mxu0 %v41_v12  ;;  %v39_v16 = vld [vmem:[%s477_s1 + $0x38] sm:$0xff]  ;;  %v50_v17 = vld [vmem:[%s477_s1 + $0x90] sm:$0xff]  ;;  %232 = vmatpush.msra.mxu2 %v41_v12  ;;  %vm63_vm0 = vcmask 719872   ;;  %vm139_vm1 = vcmask 261120  }
   0xf   :  { %116 = vmatpush.msra.mxu1 %v52_v13  ;;  %v38_v18 = vld [vmem:[%s477_s1 + $0x30] sm:$0xff]  ;;  %v49_v19 = vld [vmem:[%s477_s1 + $0x88] sm:$0xff]  ;;  %v48_v21 = vld [vmem:[%s477_s1 + $0x80] sm:$0xff]  ;;  %s271_s28 = smov [#allocation2]   ;;  %vm203_vm2 = vcmask 123904  }
  0x10   :  { %83 = vmatpush.msra.mxu0 %v40_v14  ;;  %233 = vmatpush.msra.mxu2 %v40_v14  ;;  %v37_v20 = vld [vmem:[%s477_s1 + $0x28] sm:$0xff]  ;;  %v36_v23 = vld [vmem:[%s477_s1 + $0x20] sm:$0xff]  ;;  %v35_v24 = vld [vmem:[%s477_s1 + $0x18] sm:$0xff]  ;;  %s210_s29 = sshll.u32 %s271_s28, 4  ;;  %s211_s29 = int_to_ptr.vmem [resolvable:$true] %s210_s29 }
  0x11   :  { %117 = vmatpush.msra.mxu1 %v51_v15  ;;  %v25_v22 = vld [vmem:[%s476_s0 + $0x8] sm:$0xff]  ;;  %v34_v25 = vld [vmem:[%s477_s1 + $0x10] sm:$0xff]  ;;  %v27_v27 = vld [vmem:[%s476_s0 + $0x18] sm:$0xff] }
  0x12   :  { %84 = vmatpush.msra.mxu0 %v39_v16  ;;  %234 = vmatpush.msra.mxu2 %v39_v16  ;;  %v33_v26 = vld [vmem:[%s477_s1 + $0x8] sm:$0xff]  ;;  %v32_v28 = vld [vmem:[%s477_s1] sm:$0xff]  ;;  %v30_v30 = vld [vmem:[%s476_s0 + $0x30] sm:$0xff] }
  0x13   :  { %118 = vmatpush.msra.mxu1 %v50_v17  ;;  %v24_v29 = vld [vmem:[%s476_s0] sm:$0xff]  ;;  %v29_v31 = vld [vmem:[%s476_s0 + $0x28] sm:$0xff]  ;;  %v26_v32 = vld [vmem:[%s476_s0 + $0x10] sm:$0xff] }
  0x14   :  { %85 = vmatpush.msra.mxu0 %v38_v18  ;;  %235 = vmatpush.msra.mxu2 %v38_v18  ;;  %v31_v33 = vld [vmem:[%s476_s0 + $0x38] sm:$0xff]  ;;  %v28_v34 = vld [vmem:[%s476_s0 + $0x20] sm:$0xff]  ;;  %v177_v37 = vld [vmem:[%s480_s4 + $0x70] sm:$0xff] }
  0x15   :  { %119 = vmatpush.msra.mxu1 %v49_v19  ;;  %v178_v36 = vld [vmem:[%s480_s4 + $0x78] sm:$0xff]  ;;  %v176_v39 = vld [vmem:[%s480_s4 + $0x68] sm:$0xff]  ;;  %v175_v41 = vld [vmem:[%s480_s4 + $0x60] sm:$0xff] }
  0x16   :  { %86 = vmatpush.msra.mxu0 %v37_v20  ;;  %236 = vmatpush.msra.mxu2 %v37_v20  ;;  %v174_v42 = vld [vmem:[%s480_s4 + $0x58] sm:$0xff]  ;;  %v173_v43 = vld [vmem:[%s480_s4 + $0x50] sm:$0xff]  ;;  %v172_v45 = vld [vmem:[%s480_s4 + $0x48] sm:$0xff] }
  0x17   :  { %120 = vmatpush.msra.mxu1 %v48_v21  ;;  %183 = vmatpush.msra.mxu3 %v178_v36  ;;  %v171_v48 = vld [vmem:[%s480_s4 + $0x40] sm:$0xff]  ;;  %v170_v50 = vld [vmem:[%s480_s4 + $0x38] sm:$0xff]  ;;  %v169_v52 = vld [vmem:[%s480_s4 + $0x30] sm:$0xff] }
  0x18   :  { %221 = vmatmul.msk.f32.vlgmr.msra.gmra.mxu1 %vm63_vm0, %v25_v22  ;;  %87 = vmatpush.msra.mxu0 %v36_v23  ;;  %v243_v49 = vld [vmem:[%s478_s2] ss:$0 sm:$0xff]  ;;  %v168_v54 = vld [vmem:[%s480_s4 + $0x28] sm:$0xff]  ;;  %v166_v62 = vld [vmem:[%s480_s4 + $0x18] sm:$0xff] }
  0x19   :  { %237 = vmatpush.msra.mxu2 %v36_v23  ;;  %184 = vmatpush.msra.mxu3 %v177_v37  ;;  %v167_v58 = vld [vmem:[%s480_s4 + $0x20] sm:$0xff]  ;;  %v165_v1 = vld [vmem:[%s480_s4 + $0x10] sm:$0xff]  ;;  %v164_v4 = vld [vmem:[%s480_s4 + $0x8] sm:$0xff] }
  0x1a   :  { %88 = vmatpush.msra.mxu0 %v35_v24  ;;  %v138_v7 = vld [vmem:[%s479_s3] sm:$0x3]  ;;  %s212_s3 = sshll.u32 %s482_s6, 4  ;;  %s213_s3 = int_to_ptr.hbm [resolvable:$true] %s212_s3 }
  0x1b   :  { %238 = vmatpush.msra.mxu2 %v35_v24  ;;  %185 = vmatpush.msra.mxu3 %v176_v39  ;;  %v163_v8 = vld [vmem:[%s480_s4] sm:$0xff] }
  0x1c   :  { %89 = vmatpush.msra.mxu0 %v34_v25  ;;  %v244_v10 = vld [vmem:[%s481_s5] ss:$0 sm:$0xff] }
  0x1d   :  { %239 = vmatpush.msra.mxu2 %v34_v25  ;;  %186 = vmatpush.msra.mxu3 %v175_v41 }
  0x1e   :  { %90 = vmatpush.msra.mxu0 %v33_v26 }
  0x1f   :  { %240 = vmatpush.msra.mxu2 %v33_v26  ;;  %187 = vmatpush.msra.mxu3 %v174_v42 }
  0x20   :  { %222 = vmatmul.msk.f32.gmra.mxu1 %vm63_vm0, %v27_v27  ;;  %91 = vmatpush.msra.mxu0 %v32_v28 }
  0x21   :  { %92 = vmatmul.f32.vlgmr.msra.gmra.mxu0 %v24_v29  ;;  %241 = vmatpush.msra.mxu2 %v32_v28 }
  0x22   :  { %101 = vmatmul.f32.vlgmr.msra.gmra.mxu2 %v30_v30  ;;  %188 = vmatpush.msra.mxu3 %v173_v43 }
  0x24   :  { %189 = vmatpush.msra.mxu3 %v172_v45 }
  0x26   :  { %190 = vmatpush.msra.mxu3 %v171_v48 }
  0x28   :  { %223 = vmatmul.msk.f32.gmra.mxu1 %vm63_vm0, %v29_v31  ;;  %191 = vmatpush.msra.mxu3 %v170_v50 }
  0x29   :  { %95 = vmatmul.f32.gmra.mxu0 %v26_v32 }
  0x2a   :  { %192 = vmatpush.msra.mxu3 %v169_v52 }
  0x2c   :  { %193 = vmatpush.msra.mxu3 %v168_v54 }
  0x2e   :  { %194 = vmatpush.msra.mxu3 %v167_v58 }
  0x30   :  { %224 = vmatmul.msk.f32.gmra.mxu1 %vm63_vm0, %v31_v33  ;;  %195 = vmatpush.msra.mxu3 %v166_v62 }
  0x31   :  { %98 = vmatmul.f32.gmra.mxu0 %v28_v34 }
  0x32   :  { %196 = vmatpush.msra.mxu3 %v165_v1 }
  0x34   :  { %197 = vmatpush.msra.mxu3 %v164_v4 }
  0x36   :  { %198 = vmatpush.msra.mxu3 %v163_v8 }
  0x95   :  { %v122_v35 = vpop.f32.mrf.mxu1 }
  0x9d   :  { %v125_v38 = vpop.f32.mrf.mxu1 }
  0x9e   :  { %v93_v40 = vpop.f32.mrf.mxu0 }
  0x9f   :  { %v94_v59 = vadd.f32 %v243_v49, %v93_v40 }
  0xa1   :  { %v123_v3 = vadd.f32 %v122_v35, %v94_v59 }
  0xa3   :  { %v134_v6 = vmax.f32 %v123_v3, 0.0 }
  0xa5   :  { %v128_v44 = vpop.f32.mrf.mxu1  ;;  %v102_v47 = vpop.f32.mrf.mxu2 }
  0xa6   :  { %v96_v46 = vpop.f32.mrf.mxu0  ;;  %v103_v51 = vadd.f32 %v243_v49, %v102_v47 }
  0xa7   :  { %v97_v55 = vadd.f32 %v243_v49, %v96_v46 }
  0xa9   :  { %v126_v0 = vadd.f32 %v125_v38, %v97_v55 }
  0xab   :  { %v135_v5 = vmax.f32 %v126_v0, 0.0 }
  0xad   :  { %v131_v53 = vpop.f32.mrf.mxu1 }
  0xae   :  { %v132_v56 = vadd.f32 %v131_v53, %v103_v51  ;;  %v99_v57 = vpop.f32.mrf.mxu0 }
  0xaf   :  { %v100_v60 = vadd.f32 %v243_v49, %v99_v57 }
  0xb0   :  { %v137_v61 = vmax.f32 %v132_v56, 0.0 }
  0xb1   :  { %v129_v63 = vadd.f32 %v128_v44, %v100_v60 }
  0xb2   :  { %155 = vmatpush.msrb.mxu2 %v137_v61 }
  0xb3   :  { %v136_v2 = vmax.f32 %v129_v63, 0.0 }
  0xb5   :  { %156 = vmatpush.msrb.mxu2 %v136_v2 }
  0xb7   :  { %157 = vmatpush.msrb.mxu2 %v135_v5 }
  0xb9   :  { %158 = vmatpush.msrb.mxu2 %v134_v6 }
  0xba   :  { %225 = vmatmul.msk.f32.vlgmr.msrb.gmra.mxu2 %vm139_vm1, %v138_v7 }
 0x13d   :  { %v160_v9 = vpop.f32.mrf.mxu2 }
 0x13e   :  { %199 = vmatmul.f32.vlgmr.msra.gmra.mxu3 %v160_v9 }
 0x1c1   :  { %v200_v11 = vpop.f32.mrf.mxu3 }
 0x1c2   :  { %v201_v12 = vadd.f32 %v244_v10, %v200_v11 }
 0x1c4   :  { %204 = vst.msk [vmem:[#allocation2] sm:$0x3] %vm203_vm2, %v201_v12 }
 0x1c5   :  { %215 = dma.vmem_to_hbm [thread:$0]  %s211_s29, 32, %s213_s3, [#allocation3]  }
 0x1c6   :  { %269 = dma.done.wait [#allocation3], 32  }
 0x1c7   :  { %270 = vsyncadd [#allocation3], 4294967264 }
 0x1c8   :  { %220 = vsyncpa [#allocation3], 1 }

</bundles_post_ra>
